<compile_context>
chip_gen: v6e
topology: v6e:2x2x1
jax: 0.10.0
libtpu: 0.0.40
codegen_flags: <defaults>
</compile_context>

<pallas_src>
import functools

import jax
import jax.numpy as jnp
from jax import lax
from jax.experimental import pallas as pl
from jax.experimental.pallas import tpu as pltpu

_MIB = 1 << 20


# ---------------------------------------------------------------------------
# Device introspection (generation-aware budgets).
# ---------------------------------------------------------------------------
def _vmem_capacity_bytes():
    """Physical per-TensorCore VMEM (128 MiB on v5e/v6e, 64 MiB on v7x)."""
    try:
        cap = int(getattr(pltpu.get_tpu_info(), "vmem_capacity_bytes", 0))
        if cap > 0:
            return cap
    except Exception:
        pass
    return 64 * _MIB  # conservative default (v7x)


def _vmem_ceiling_bytes():
    """Scoped-VMEM ceiling we are willing to request from the compiler: stay
    below physical capacity (~52 MiB on v7x, 100 MiB on v5e/v6e)."""
    return int(min(100 * _MIB, (_vmem_capacity_bytes() * 13) // 16))


def _num_tensorcores():
    """TensorCores per chip: 2 on v7x, 1 on v5e/v6e (device-kind heuristic)."""
    try:
        kind = str(jax.devices()[0].device_kind).lower()
        if "v7" in kind or "7x" in kind:
            return 2
    except Exception:
        pass
    return 1


def _round_up(v, m):
    return ((v + m - 1) // m) * m


# ---------------------------------------------------------------------------
# Path 1: fused single kernel, whole (C, T) slab per batch element.
# ---------------------------------------------------------------------------
def _gln_fused_kernel(x_ref, gamma_ref, beta_ref, o_ref, *, eps, inv_count):
    # x block: (1, C, T) -- one batch element resident in VMEM.
    x = x_ref[...].astype(jnp.float32)

    # Two-pass stats on the VMEM-resident slab (the second pass only re-reads
    # VMEM, not HBM): numerically stable, no E[x^2]-mean^2 cancellation.
    row_sum = jnp.sum(x, axis=-1, keepdims=True)          # (1, C, 1)
    mean = jnp.sum(row_sum) * inv_count                   # scalar
    centered = x - mean
    row_var = jnp.sum(centered * centered, axis=-1, keepdims=True)
    var = jnp.sum(row_var) * inv_count
    inv_std = lax.rsqrt(var + eps)

    gamma = gamma_ref[...].astype(jnp.float32)            # (C, 1)
    beta = beta_ref[...].astype(jnp.float32)               # (C, 1)
    scale = gamma * inv_std                                # (C, 1)

    # Fused FMA epilogue: y = (x - mean) * (gamma * inv_std) + beta
    o_ref[...] = (centered * scale[None, :, :] + beta[None, :, :]).astype(o_ref.dtype)


def _gln_fused(x, gamma, beta, eps, vmem_ceiling):
    N, C, T = x.shape
    itemsize = jnp.dtype(x.dtype).itemsize
    slab_bytes = C * T * itemsize
    f32_slab = C * T * 4
    # 2x input + 2x output double buffers + in-kernel f32 temporaries
    # (cast slab + centered slab) + headroom; clamped to the device ceiling.
    vmem_limit = int(min(vmem_ceiling, 4 * slab_bytes + 2 * f32_slab + 4 * _MIB))

    kernel = functools.partial(
        _gln_fused_kernel, eps=float(eps), inv_count=1.0 / float(C * T)
    )
    return pl.pallas_call(
        kernel,
        out_shape=jax.ShapeDtypeStruct((N, C, T), x.dtype),
        grid_spec=pltpu.PrefetchScalarGridSpec(
            num_scalar_prefetch=0,
            grid=(N,),
            in_specs=[
                pl.BlockSpec((1, C, T), lambda n: (n, 0, 0)),
                # gamma/beta are tiny; constant block index -> not re-DMA'd
                # between consecutive grid steps.
                pl.BlockSpec((C, 1), lambda n: (0, 0)),
                pl.BlockSpec((C, 1), lambda n: (0, 0)),
            ],
            out_specs=pl.BlockSpec((1, C, T), lambda n: (n, 0, 0)),
        ),
        compiler_params=pltpu.CompilerParams(
            dimension_semantics=("parallel",),
            vmem_limit_bytes=vmem_limit,
        ),
    )(x, gamma, beta)


# ---------------------------------------------------------------------------
# Path 2: stats kernel + normalize kernel, tiled over T.
# ---------------------------------------------------------------------------
def _gln_stats_kernel(x_ref, sum_ref, sq_ref):
    # Accumulate per-(batch, chunk, channel) sum / sum-of-squares over T tiles.
    @pl.when(pl.program_id(2) == 0)
    def _():
        sum_ref[...] = jnp.zeros_like(sum_ref)
        sq_ref[...] = jnp.zeros_like(sq_ref)

    x = x_ref[...].astype(jnp.float32)                        # (1, C, tile)
    sum_ref[...] += jnp.sum(x, axis=-1, keepdims=True)[:, None]   # (1,1,C,1)
    sq_ref[...] += jnp.sum(x * x, axis=-1, keepdims=True)[:, None]


def _gln_normalize_kernel(x_ref, mean_ref, inv_std_ref, gamma_ref, beta_ref, o_ref):
    # Pure FMA pass, lane-dense T tiles.  scale/shift are rebuilt from the
    # per-batch scalars + per-channel affine (tiny: C muls per tile), which
    # avoids materializing (N, C, 1) scale/shift arrays in HBM.
    x = x_ref[...].astype(jnp.float32)                        # (1, C, tile)
    mean = mean_ref[...]                                      # (1, 1, 1) f32
    inv_std = inv_std_ref[...]                                # (1, 1, 1) f32
    gamma = gamma_ref[...].astype(jnp.float32)[None]          # (1, C, 1)
    beta = beta_ref[...].astype(jnp.float32)[None]            # (1, C, 1)
    scale = gamma * inv_std                                   # (1, C, 1)
    shift = beta - mean * scale                               # (1, C, 1)
    o_ref[...] = (x * scale + shift).astype(o_ref.dtype)


def _choose_time_tiling(T, C, itemsize, target_bytes):
    """Pick a lane-dense (multiple-of-128) time tile.  Prefer a divisor of T
    (no padding); otherwise pad T up to a multiple of the chosen tile."""
    bytes_per_lane = max(1, C * itemsize)
    divisors = [t for t in range(128, T + 1, 128) if T % t == 0]
    fitting = [t for t in divisors if t * bytes_per_lane <= target_bytes]
    if fitting:
        return max(fitting), T
    if divisors:
        return min(divisors), T
    tile = max(128, (target_bytes // bytes_per_lane) // 128 * 128)
    tile = min(tile, _round_up(T, 128))
    return tile, _round_up(T, tile)


def _gln_split(x, gamma, beta, eps, tile, t_padded, vmem_ceiling, num_tc,
               stat_chunks):
    N, C, T = x.shape
    itemsize = jnp.dtype(x.dtype).itemsize

    # Zero-pad T wrapper-side if needed; zeros contribute nothing to sum/sumsq
    # and inv_count below uses the true C*T, so stats stay exact.
    x_p = x if t_padded == T else jnp.pad(x, ((0, 0), (0, 0), (0, t_padded - T)))
    n_tiles = t_padded // tile

    # Parallel T-chunks for the stats reduction: keeps both v7x TensorCores
    # streaming when N is smaller than the core count.  No-op (nchunk=1) on
    # single-core chips.
    if stat_chunks is not None:
        nchunk = int(stat_chunks)
    elif num_tc > 1 and N < num_tc:
        nchunk = num_tc
    else:
        nchunk = 1
    if nchunk < 1 or n_tiles % nchunk != 0:
        nchunk = 1
    tiles_per_chunk = n_tiles // nchunk

    tile_bytes = C * tile * itemsize
    tile_f32 = C * tile * 4

    def x_stats_map(n, c, t):
        return (n, 0, c * tiles_per_chunk + t)

    # input double buffer + f32 temporaries (cast + x*x) + headroom.
    stats_vmem = int(min(vmem_ceiling, 2 * tile_bytes + 2 * tile_f32 + 4 * _MIB))
    sums, sqs = pl.pallas_call(
        _gln_stats_kernel,
        out_shape=(
            jax.ShapeDtypeStruct((N, nchunk, C, 1), jnp.float32),
            jax.ShapeDtypeStruct((N, nchunk, C, 1), jnp.float32),
        ),
        grid_spec=pltpu.PrefetchScalarGridSpec(
            num_scalar_prefetch=0,
            grid=(N, nchunk, tiles_per_chunk),
            in_specs=[pl.BlockSpec((1, C, tile), x_stats_map)],
            out_specs=[
                pl.BlockSpec((1, 1, C, 1), lambda n, c, t: (n, c, 0, 0)),
                pl.BlockSpec((1, 1, C, 1), lambda n, c, t: (n, c, 0, 0)),
            ],
        ),
        compiler_params=pltpu.CompilerParams(
            dimension_semantics=("parallel", "parallel", "arbitrary"),
            vmem_limit_bytes=stats_vmem,
        ),
    )(x_p)

    # Tiny per-batch finalize in plain JAX: global mean / inv_std.
    inv_count = 1.0 / float(C * T)
    mean = (jnp.sum(sums, axis=(1, 2, 3)) * inv_count).reshape(N, 1, 1)
    ex2 = (jnp.sum(sqs, axis=(1, 2, 3)) * inv_count).reshape(N, 1, 1)
    var = jnp.maximum(ex2 - mean * mean, 0.0)
    inv_std = lax.rsqrt(var + eps)

    # 2 in + 2 out double buffers + f32 temporaries + headroom, clamped.
    norm_vmem = int(min(vmem_ceiling, 4 * tile_bytes + 2 * tile_f32 + 4 * _MIB))
    # NOTE: if VMEM pressure ever forces tiny tiles, pipeline_mode=pl.Buffered(3)
    # on the x in_spec would help hide per-step DMA latency; tiles chosen here
    # are large enough that the default double buffering suffices.
    out_p = pl.pallas_call(
        _gln_normalize_kernel,
        out_shape=jax.ShapeDtypeStruct((N, C, t_padded), x.dtype),
        grid_spec=pltpu.PrefetchScalarGridSpec(
            num_scalar_prefetch=0,
            grid=(N, n_tiles),
            in_specs=[
                pl.BlockSpec((1, C, tile), lambda n, t: (n, 0, t)),
                pl.BlockSpec((1, 1, 1), lambda n, t: (n, 0, 0)),
                pl.BlockSpec((1, 1, 1), lambda n, t: (n, 0, 0)),
                pl.BlockSpec((C, 1), lambda n, t: (0, 0)),
                pl.BlockSpec((C, 1), lambda n, t: (0, 0)),
            ],
            out_specs=pl.BlockSpec((1, C, tile), lambda n, t: (n, 0, t)),
        ),
        compiler_params=pltpu.CompilerParams(
            dimension_semantics=("parallel", "parallel"),
            vmem_limit_bytes=norm_vmem,
        ),
    )(x_p, mean, inv_std, gamma, beta)

    return out_p if t_padded == T else out_p[:, :, :T]


# ---------------------------------------------------------------------------
# Public wrapper
# ---------------------------------------------------------------------------
def global_channel_layer_norm(x, gamma=None, beta=None, eps=1e-5, *,
                              force_split=False, time_tile=None,
                              stat_chunks=None):
    """gLN(x) for x: (N, C, T); gamma, beta: (C, 1) (None -> identity affine)."""
    N, C, T = x.shape
    if gamma is None:
        gamma = jnp.ones((C, 1), x.dtype)
    if beta is None:
        beta = jnp.zeros((C, 1), x.dtype)
    assert gamma.shape == (C, 1) and beta.shape == (C, 1)

    itemsize = jnp.dtype(x.dtype).itemsize
    slab_bytes = C * T * itemsize
    f32_slab = C * T * 4
    vmem_ceiling = _vmem_ceiling_bytes()
    num_tc = _num_tensorcores()

    # Fused-path footprint: double-buffered in/out blocks plus the in-kernel
    # f32 temporaries (cast slab + centered slab), plus headroom.
    fused_footprint = 4 * slab_bytes + 2 * f32_slab + 2 * _MIB
    fused_fits = fused_footprint <= vmem_ceiling
    # Fused grid is (N,) -> with N < TensorCores (v7x, batch-1 inference) one
    # core would idle; the split path tiles T so both cores stream x.
    prefer_split_for_cores = num_tc > 1 and N < num_tc and slab_bytes >= _MIB

    if force_split or not fused_fits or prefer_split_for_cores:
        if time_tile is not None:
            tile = int(time_tile)
            if tile % 128 != 0 and tile != T:
                raise ValueError("time_tile must be a multiple of 128 (or == T)")
            t_padded = _round_up(T, tile)
        else:
            target_tile_bytes = max(512 * 1024, vmem_ceiling // 8)
            tile, t_padded = _choose_time_tiling(T, C, itemsize, target_tile_bytes)
        return _gln_split(x, gamma, beta, eps, tile, t_padded, vmem_ceiling,
                          num_tc, stat_chunks)
    return _gln_fused(x, gamma, beta, eps, vmem_ceiling)


def _reference(x, gamma, beta, eps=1e-5):
    mean = jnp.mean(x, axis=(1, 2), keepdims=True)
    var = jnp.mean((x - mean) ** 2, axis=(1, 2), keepdims=True)
    return gamma[None, :, :] * (x - mean) / jnp.sqrt(var + eps) + beta[None, :, :]


if __name__ == "__main__":
    key = jax.random.PRNGKey(0)
    keys = jax.random.split(key, 8)

    def check(out, ref, name):
        assert out.shape == ref.shape, f"{name} shape mismatch"
        assert jnp.allclose(out, ref, atol=1e-5, rtol=1e-5), f"{name} value mismatch"

    # --- Test 1: fused whole-slab path (small gLN shape, N x C x T) ---
    N, C, T = 2, 4, 16
    x = jax.random.normal(keys[0], (N, C, T), dtype=jnp.float32)
    gamma = jnp.ones((C, 1), jnp.float32) + 0.1 * jax.random.normal(keys[1], (C, 1))
    beta = jnp.zeros((C, 1), jnp.float32) + 0.1 * jax.random.normal(keys[2], (C, 1))
    out = jax.block_until_ready(global_channel_layer_norm(x, gamma, beta, eps=1e-5))
    check(out, _reference(x, gamma, beta, eps=1e-5), "fused")

    # --- Test 2: split stats->normalize path, multiple lane-dense T tiles ---
    N2, C2, T2 = 2, 8, 256
    x2 = jax.random.normal(keys[3], (N2, C2, T2), dtype=jnp.float32)
    gamma2 = jnp.ones((C2, 1), jnp.float32) + 0.1 * jax.random.normal(keys[4], (C2, 1))
    beta2 = jnp.zeros((C2, 1), jnp.float32) + 0.1 * jax.random.normal(keys[5], (C2, 1))
    out2 = jax.block_until_ready(global_channel_layer_norm(
        x2, gamma2, beta2, eps=1e-5, force_split=True, time_tile=128))
    check(out2, _reference(x2, gamma2, beta2, eps=1e-5), "split")

    # --- Test 3: split path, N=1, 2 parallel stats chunks (v7x megacore path) ---
    x3 = jax.random.normal(keys[6], (1, 8, 512), dtype=jnp.float32) + 0.5
    out3 = jax.block_until_ready(global_channel_layer_norm(
        x3, gamma2, beta2, eps=1e-5, force_split=True, time_tile=128,
        stat_chunks=2))
    check(out3, _reference(x3, gamma2, beta2, eps=1e-5), "split-chunked")

    # --- Test 4: split path with wrapper-side zero padding (T=200, no /128) ---
    x4 = jax.random.normal(keys[7], (2, 4, 200), dtype=jnp.float32)
    out4 = jax.block_until_ready(global_channel_layer_norm(
        x4, gamma, beta, eps=1e-5, force_split=True))
    check(out4, _reference(x4, gamma, beta, eps=1e-5), "split-padded")

    print("KERNEL_OK")
</pallas_src>

<mosaic_0001>
module attributes {stable_mosaic.version = 11 : i64} {
  func.func @_gln_fused_kernel(%arg0: i32, %arg1: memref<1x4x16xf32, #tpu.memory_space<vmem>>, %arg2: memref<4x1xf32, #tpu.memory_space<vmem>>, %arg3: memref<4x1xf32, #tpu.memory_space<vmem>>, %arg4: memref<1x4x16xf32, #tpu.memory_space<vmem>>) attributes {dimension_semantics = [#tpu.dimension_semantics<parallel>], iteration_bounds = array<i64: 2>, scalar_prefetch = 0 : i64, scratch_operands = 0 : i64, tpu.core_type = #tpu.core_type<tc>, window_params = [{transform_indices = @transform_0, window_bounds = array<i64: 1, 4, 16>}, {pipeline_mode = #tpu.pipeline_mode<synchronous>, transform_indices = @transform_1, window_bounds = array<i64: 4, 1>}, {pipeline_mode = #tpu.pipeline_mode<synchronous>, transform_indices = @transform_2, window_bounds = array<i64: 4, 1>}, {transform_indices = @transform_3, window_bounds = array<i64: 1, 4, 16>}]} {
    %c0 = arith.constant 0 : index
    %c0_0 = arith.constant 0 : index
    %c0_1 = arith.constant 0 : index
    %0 = vector.load %arg1[%c0, %c0_0, %c0_1] : memref<1x4x16xf32, #tpu.memory_space<vmem>>, vector<1x4x16xf32>
    %cst = arith.constant dense<0.000000e+00> : vector<1x4xf32>
    %1 = vector.multi_reduction <add>, %0, %cst [2] : vector<1x4x16xf32> to vector<1x4xf32>
    %2 = vector.shape_cast %1 : vector<1x4xf32> to vector<1x4x1xf32>
    %3 = vector.shape_cast %2 : vector<1x4x1xf32> to vector<1x1x4x1xf32>
    %cst_2 = arith.constant dense<0.000000e+00> : vector<1xf32>
    %4 = vector.multi_reduction <add>, %3, %cst_2 [1, 2, 3] : vector<1x1x4x1xf32> to vector<1xf32>
    %5 = vector.shape_cast %4 : vector<1xf32> to vector<1x1x1x1xf32>
    %6 = vector.extract %5[0, 0, 0, 0] : f32 from vector<1x1x1x1xf32>
    %cst_3 = arith.constant 1.562500e-02 : f32
    %7 = arith.mulf %6, %cst_3 : f32
    %8 = vector.broadcast %7 : f32 to vector<1x4x16xf32>
    %9 = arith.subf %0, %8 : vector<1x4x16xf32>
    %10 = arith.mulf %9, %9 : vector<1x4x16xf32>
    %cst_4 = arith.constant dense<0.000000e+00> : vector<1x4xf32>
    %11 = vector.multi_reduction <add>, %10, %cst_4 [2] : vector<1x4x16xf32> to vector<1x4xf32>
    %12 = vector.shape_cast %11 : vector<1x4xf32> to vector<1x4x1xf32>
    %13 = vector.shape_cast %12 : vector<1x4x1xf32> to vector<1x1x4x1xf32>
    %cst_5 = arith.constant dense<0.000000e+00> : vector<1xf32>
    %14 = vector.multi_reduction <add>, %13, %cst_5 [1, 2, 3] : vector<1x1x4x1xf32> to vector<1xf32>
    %15 = vector.shape_cast %14 : vector<1xf32> to vector<1x1x1x1xf32>
    %16 = vector.extract %15[0, 0, 0, 0] : f32 from vector<1x1x1x1xf32>
    %cst_6 = arith.constant 1.562500e-02 : f32
    %17 = arith.mulf %16, %cst_6 : f32
    %cst_7 = arith.constant 9.99999974E-6 : f32
    %18 = arith.addf %17, %cst_7 : f32
    %19 = math.rsqrt %18 : f32
    %c0_8 = arith.constant 0 : index
    %c0_9 = arith.constant 0 : index
    %20 = vector.load %arg2[%c0_8, %c0_9] : memref<4x1xf32, #tpu.memory_space<vmem>>, vector<4x1xf32>
    %c0_10 = arith.constant 0 : index
    %c0_11 = arith.constant 0 : index
    %21 = vector.load %arg3[%c0_10, %c0_11] : memref<4x1xf32, #tpu.memory_space<vmem>>, vector<4x1xf32>
    %22 = vector.broadcast %19 : f32 to vector<4x1xf32>
    %23 = arith.mulf %20, %22 : vector<4x1xf32>
    %24 = vector.shape_cast %23 : vector<4x1xf32> to vector<1x4x1xf32>
    %25 = vector.broadcast %24 : vector<1x4x1xf32> to vector<1x4x16xf32>
    %26 = arith.mulf %9, %25 : vector<1x4x16xf32>
    %27 = vector.shape_cast %21 : vector<4x1xf32> to vector<1x4x1xf32>
    %28 = vector.broadcast %27 : vector<1x4x1xf32> to vector<1x4x16xf32>
    %29 = arith.addf %26, %28 : vector<1x4x16xf32>
    %c0_12 = arith.constant 0 : index
    %c0_13 = arith.constant 0 : index
    %c0_14 = arith.constant 0 : index
    %30 = vector.load %arg4[%c0_12, %c0_13, %c0_14] : memref<1x4x16xf32, #tpu.memory_space<vmem>>, vector<1x4x16xf32>
    tpu.vector_store %arg4[%c0_12, %c0_13, %c0_14], %29 {strides = array<i32>} : memref<1x4x16xf32, #tpu.memory_space<vmem>>, vector<1x4x16xf32>,
    return
  }
  func.func @transform_0(%arg0: i32) -> (i32, i32, i32) {
    %c0_i32 = arith.constant 0 : i32
    %c0_i32_0 = arith.constant 0 : i32
    %c0_i32_1 = arith.constant 0 : i32
    return %arg0, %c0_i32, %c0_i32_0 : i32, i32, i32
  }
  func.func @transform_1(%arg0: i32) -> (i32, i32) {
    %c0_i32 = arith.constant 0 : i32
    %c0_i32_0 = arith.constant 0 : i32
    %c0_i32_1 = arith.constant 0 : i32
    return %c0_i32, %c0_i32_0 : i32, i32
  }
  func.func @transform_2(%arg0: i32) -> (i32, i32) {
    %c0_i32 = arith.constant 0 : i32
    %c0_i32_0 = arith.constant 0 : i32
    %c0_i32_1 = arith.constant 0 : i32
    return %c0_i32, %c0_i32_0 : i32, i32
  }
  func.func @transform_3(%arg0: i32) -> (i32, i32, i32) {
    %c0_i32 = arith.constant 0 : i32
    %c0_i32_0 = arith.constant 0 : i32
    %c0_i32_1 = arith.constant 0 : i32
    return %arg0, %c0_i32, %c0_i32_0 : i32, i32, i32
  }
}

</mosaic_0001>

<bundles_post_ra>
// kernel: tpu_custom_call.1
= control target key start
LH: loop header
LB: loop body
LE: loop exit
PB: predicated region body
PF: predicated region fallthrough
CT: control target
= control target key end

     0   :  { %8 = vsyncpa [#allocation3], 0  ;;  %s536_s0 = inlined_call_operand.vmem [shape: f32[2,4,16], index: 0, kind: input, shape index: {}]   ;;  %s537_s1 = inlined_call_operand.vmem [shape: f32[4,1], index: 1, kind: input, shape index: {}]   ;;  %s538_s2 = inlined_call_operand.vmem [shape: f32[4,1], index: 2, kind: input, shape index: {}]   ;;  %s539_s3 = inlined_call_operand.hbm [shape: f32[2,4,16], index: 3, kind: output, shape index: {}]  }
   0x1   :  { %10 = vsyncpa [#allocation3 + $0x1], 0  ;;  %s438_s12 = smov 0   ;;  %s440_s13 = smov 0  }
   0x2   :  { %s442_s14 = smov 0   ;;  %s444_s15 = smov 0  }
   0x3 LB: > { %s459_s16 = sadd.s32 4294967295, %s414_s15   ;;  %s294_s17 = sadd.s32 4294967294, %s414_s15   ;;  %s414_s15 = sphi %s444_s15, %s545_s15   ;;  %s410_s14 = sphi %s442_s14, %s544_s14   ;;  %s406_s13 = sphi %s440_s13, %s543_s13   ;;  %s402_s12 = sphi %s438_s12, %s542_s12  }
   0x4   : > { %s463_s18 = sadd.s32 1, %s414_s15   ;;  %s91_s19 = sadd.s32 1, %s410_s14 }
   0x5   : > { %s88_s20 = ssub.s32 %s414_s15, %s463_s18  ;;  %p101_p0 = scmp.ne.s32.totalorder %s410_s14, %s406_s13 }
   0x6   : > { %p89_p1 = scmp.eq.s32.totalorder %s88_s20, 0  ;;  %p102_p2 = scmp.eq.s32.totalorder %s459_s16, 1 }
   0x7   : > { %p107_p3 = scmp.ne.s32.totalorder %s406_s13, %s402_s12  ;;  %p108_p4 = scmp.eq.s32.totalorder %s294_s17, 1 }
   0x8   : > { %s474_s21 = scalar_select %p89_p1, %s410_s14, %s91_s19  }
   0x9   : > { %p476_p5 = por %p102_p2, %p101_p0  ;;  %p480_p6 = por %p108_p4, %p107_p3 }
   0xa   : > { %p297_p7 = scmp.ge.s32.totalorder %s414_s15, 1  ;;  %p139_p8 = scmp.lt.s32.totalorder %s414_s15, 3 }
   0xc   : > { %p140_p9 = pnand %p297_p7, %p139_p8 }
   0xd   : > { %p162_p10 = scmp.lt.s32.totalorder (!%p140_p9), %s459_s16, 1  ;;  %s159_s17 = sand.u32 (!%p140_p9), 1, %s406_s13  }
   0xe   : > { %143 = sbr.rel (%p140_p9) target bundleno = 924 (0x39c), region = 32  ;;  %s298_s19 = sshll.u32 (!%p140_p9), %s159_s17, 2 }
   0xf   : > { %s301_s20 = sshll.u32 (!%p140_p9), %s459_s16, 6  ;;  %s417_s4 = smov (!%p140_p9), [#allocation2]  }
  0x10   : > { %s358_s5 = sshll.u32 (!%p140_p9), %s417_s4, 4  ;;  %s359_s5 = int_to_ptr.vmem [resolvable:$false] %s358_s5 }
  0x13   : > { %s163_s24 = scalar_select %p162_p10, %s459_s16, 1  ;;  %vm167_vm0 = vcmask 125952   ;;  %vm171_vm1 = vcmask 3072   ;;  %v416_v21 = vmov 0   ;;  %v205_v23 = vld [vmem:[%s538_s2] sm:$0xf] }
  0x14   : > { %350 = vset.pattern.permute.xlu0 %v416_v21  ;;  %351 = vset.pattern.permute.xlu1 %v416_v21  ;;  %v204_v28 = vld [vmem:[%s537_s1] sm:$0xf]  ;;  %s360_s16 = scalar_lea.vmem %s359_s5, 128 }
  0x15   : > { %s299_s25 = sshll.u32 %s163_s24, 2  ;;  %s161_s24 = scalar_lea.vmem [#allocation2], %s298_s19 }
  0x16   : > { %s165_s28 = scalar_lea.vmem %s536_s0, %s299_s25  ;;  %s235_s25 = sshll.u32 %s161_s24, 4  ;;  %s236_s25 = int_to_ptr.vmem [resolvable:$true] %s235_s25 }
  0x17   : > { %v166_v0 = vld [vmem:[%s165_s28] sm:$0xf]  ;;  %s233_s28 = scalar_lea.hbm %s539_s3, %s301_s20  ;;  %p361_p0 = scmp.lt.s32.totalorder %s236_s25, %s359_s5 }
  0x18   : > { %v168_v1 = vsel %vm167_vm0, %v166_v0, 0.0 }
  0x19   : > { %169 = vadd.xlane.f32.xlu0 %v168_v1 }
  0xa2   : > { %v170_v2 = vpop.xlane.xlu0 %169 }
  0xa3   : > { %v172_v3 = vsel %vm171_vm1, %v170_v2, 0.0 }
  0xa4   : > { %173 = vadd.xlane.f32.xlu0 %v172_v3 }
 0x12d   : > { %v174_v4 = vpop.xlane.xlu0 %173 }
 0x12e   : > { %v175_v5 = vrot.slane %v174_v4, 4 }
 0x130   : > { %v176_v6 = vadd.f32 %v175_v5, %v174_v4 }
 0x132   : > { %v177_v7 = vrot.slane %v176_v6, 2 }
 0x134   : > { %v178_v8 = vadd.f32 %v177_v7, %v176_v6 }
 0x136   : > { %v179_v9 = vrot.slane %v178_v8, 1 }
 0x138   : > { %v180_v10 = vadd.f32 %v179_v9, %v178_v8 }
 0x13a   : > { %304 = vpush %v180_v10 }
 0x16b   : > { %s305_s29 = spop %304 }
 0x16c   : > { %s182_s30 = smul.f32 0.015625, %s305_s29  ;;  %s222_s29 = scalar_lea.sflag [#allocation3], %s159_s17 }
 0x16e   : > { %v183_v11 = vstv %s182_s30  ;;  %s354_s30 = scalar_lea.vmem %s236_s25, 64 }
 0x16f   : > { %v184_v12 = vsub.f32 %v166_v0, %v183_v11  ;;  %p355_p11 = scmp.ne.s32.totalorder %s236_s25, %s354_s30  ;;  %p362_p1 = scmp.lt.s32.totalorder %s360_s16, %s354_s30 }
 0x171   : > { %v185_v13 = vmul.f32 %v184_v12, %v184_v12  ;;  %p356_p12 = pnand %p355_p11, %p476_p5  ;;  %p363_p2 = por %p362_p1, %p361_p0 }
 0x173   : > { %v186_v14 = vsel %vm167_vm0, %v185_v13, 0.0  ;;  %p357_p13 = pneg %p356_p12 }
 0x174   : > { %187 = vadd.xlane.f32.xlu1 %v186_v14 }
 0x175   : > { %p364_p3 = pnand %p363_p2, %p357_p13 }
 0x1fd   : > { %v188_v15 = vpop.xlane.xlu1 %187 }
 0x1fe   : > { %v189_v16 = vsel %vm171_vm1, %v188_v15, 0.0 }
 0x1ff   : > { %190 = vadd.xlane.f32.xlu1 %v189_v16 }
 0x210   : > { %216 = vperm.xlu1 %351, %v205_v23  }
 0x288   : > { %v191_v17 = vpop.xlane.xlu1 %190 }
 0x289   : > { %v192_v18 = vrot.slane %v191_v17, 4 }
 0x28b   : > { %v193_v19 = vadd.f32 %v192_v18, %v191_v17 }
 0x28c   : > { %v217_v32 = vpop.permute.xlu1 %216 }
 0x28d   : > { %v194_v20 = vrot.slane %v193_v19, 2 }
 0x28f   : > { %v195_v22 = vadd.f32 %v194_v20, %v193_v19 }
 0x291   : > { %v196_v24 = vrot.slane %v195_v22, 1 }
 0x293   : > { %v197_v25 = vadd.f32 %v196_v24, %v195_v22 }
 0x295   : > { %306 = vpush %v197_v25 }
 0x2c6   : > { %s307_s6 = spop %306 }
 0x2c7   : > { %s199_s7 = smul.f32 0.015625, %s307_s6 }
 0x2c9   : > { %s200_s8 = sadd.f32 1e-05, %s199_s7 }
 0x2cb   : > { %v201_v26 = vstv %s200_s8 }
 0x2cc   : > { %352 = vrsqrt.f32 %v201_v26 }
 0x2d9   : > { %v353_v27 = vpop.eup %352 }
 0x2da   : > { %308 = vpush %v353_v27 }
 0x30b   : > { %s309_s11 = spop %308 }
 0x30c   : > { %v206_v29 = vstv %s309_s11 }
 0x30d   : > { %v207_v30 = vmul.f32 %v206_v29, %v204_v28 }
 0x30f   : > { %210 = vperm.xlu0 %350, %v207_v30  }
 0x38a   : > { %v211_v31 = vpop.permute.xlu0 %210 }
 0x38b   : > { %v213_v33 = vmul.f32 %v211_v31, %v184_v12 }
 0x38d   : > { %v219_v34 = vadd.f32 %v217_v32, %v213_v33 }
 0x38f   : > { %220 = vst.msk [vmem:[%s161_s24] sm:$0xf] %vm167_vm0, %v219_v34 }
 0x390   : > { %367 = shalt.err (!%p364_p3)
}
 0x391   : > { %s368_s6 = scalar_lea.hbm %s233_s28, 64  ;;  %s372_s9 = scalar_lea.hbm %s539_s3, 128 }
 0x392   : > { %p369_p4 = scmp.ne.s32.totalorder %s233_s28, %s368_s6  ;;  %p373_p9 = scmp.lt.s32.totalorder %s233_s28, %s539_s3 }
 0x393   : > { %p374_p10 = scmp.lt.s32.totalorder %s372_s9, %s368_s6 }
 0x394   : > { %p370_p7 = pnand %p369_p4, %p476_p5 }
 0x395   : > { %p375_p11 = por %p374_p10, %p373_p9 }
 0x396   : > { %p371_p8 = pneg %p370_p7 }
 0x398   : > { %p376_p12 = pnand %p375_p11, %p371_p8 }
 0x39a   : > { %379 = shalt.err (!%p376_p12)
}
 0x39b   : > { %310 = dma.vmem_to_hbm [thread:$0]  (%p476_p5), %s236_s25, 64, %s233_s28, %s222_s29  }
 0x39c PF: > { %p316_p13 = scmp.ge.s32.totalorder %s414_s15, 2  ;;  %s247_s17 = sand.u32 1, %s402_s12  }
 0x39d   : > { %s248_s19 = scalar_lea.sflag [#allocation3], %s247_s17 }
 0x39e   : > { %p313_p0 = pnand %p316_p13, %p480_p6 }
 0x3a0   : > { %p314_p1 = pneg %p313_p0 }
 0x3a2   : > { %397 = dma.done.wait (%p314_p1), %s248_s19, 64  }
 0x3a3   : > { %399 = vsyncadd (%p314_p1), %s248_s19, 4294967232  ;;  %p13_p2 = scmp.ge.s32.totalorder %s463_s18, 4   ;;  %s542_s12 = smov %s406_s13 }
 0x3a4   : > { %s543_s13 = smov %s410_s14  ;;  %s544_s14 = smov %s474_s21 }
 0x3a5   : > { %s545_s15 = smov %s463_s18  ;;  %15 = sbr.rel (!%p13_p2) target bundleno = 3 (0x3), region = 67 }
 0x3aa   :  { %253 = vsyncpa [#allocation3], 1 }
 0x3ab   :  { %255 = vsyncpa [#allocation3 + $0x1], 1 }

</bundles_post_ra>
